<compile_context>
chip_gen: v7x
topology: tpu7x:2x2x1
jax: 0.10.0
libtpu: 0.0.40
codegen_flags: <defaults>
</compile_context>

<pallas_src>
import functools

import jax
import jax.numpy as jnp
from jax import lax
from jax.experimental import pallas as pl
from jax.experimental.pallas import tpu as pltpu


def _round_up(x: int, m: int) -> int:
    return ((x + m - 1) // m) * m


# ---------------------------------------------------------------------------
# Kernels
# ---------------------------------------------------------------------------
def _fused_kernel(x_ref, w_ref, c_ref, o_ref):
    # Single-pass path (K fits in one tile): MXU matmul contracting on K with the
    # weight in its native (S, K) layout, then fused residual add + ReLU on the VPU.
    y = lax.dot_general(
        x_ref[...],
        w_ref[...],
        dimension_numbers=(((1,), (1,)), ((), ())),
        preferred_element_type=jnp.float32,
    )
    o_ref[...] = jnp.maximum(y + c_ref[...].astype(jnp.float32), 0.0).astype(o_ref.dtype)


def _ktiled_kernel(x_ref, w_ref, c_ref, o_ref, acc_ref):
    # Reduction over K in the last (arbitrary) grid axis with an f32 VMEM accumulator.
    k = pl.program_id(2)

    @pl.when(k == 0)
    def _():
        acc_ref[...] = jnp.zeros_like(acc_ref)

    acc_ref[...] += lax.dot_general(
        x_ref[...],
        w_ref[...],
        dimension_numbers=(((1,), (1,)), ((), ())),
        preferred_element_type=jnp.float32,
    )

    @pl.when(k == pl.num_programs(2) - 1)
    def _():
        o_ref[...] = jnp.maximum(
            acc_ref[...] + c_ref[...].astype(jnp.float32), 0.0
        ).astype(o_ref.dtype)


# ---------------------------------------------------------------------------
# pallas_call wrappers
# ---------------------------------------------------------------------------
@functools.partial(jax.jit, static_argnames=("tm", "tn"))
def _concat_resnet_2d_fullk(x, w, c, *, tm, tn):
    Mp, K = x.shape
    Sp = w.shape[0]
    grid = (Mp // tm, Sp // tn)

    # Double-buffered tile footprint (f32): x (tm,K) + w (tn,K) + concat/out (tm,tn) each.
    tile_bytes = 2 * 4 * (tm * K + tn * K + 2 * tm * tn) + (4 << 20)
    vmem_bytes = int(max(16 << 20, min(tile_bytes, 64 << 20)))

    return pl.pallas_call(
        _fused_kernel,
        out_shape=jax.ShapeDtypeStruct((Mp, Sp), x.dtype),
        grid_spec=pltpu.PrefetchScalarGridSpec(
            num_scalar_prefetch=0,
            grid=grid,
            in_specs=[
                pl.BlockSpec((tm, K), lambda i, j: (i, 0)),   # x row-tile (full K)
                pl.BlockSpec((tn, K), lambda i, j: (j, 0)),   # weight S-tile, native (S,K)
                pl.BlockSpec((tm, tn), lambda i, j: (i, j)),  # concat tile
            ],
            out_specs=pl.BlockSpec((tm, tn), lambda i, j: (i, j)),
        ),
        compiler_params=pltpu.CompilerParams(
            dimension_semantics=("parallel", "parallel"),
            vmem_limit_bytes=vmem_bytes,
        ),
    )(x, w, c)


@functools.partial(jax.jit, static_argnames=("tm", "tn", "tk"))
def _concat_resnet_2d_ktiled(x, w, c, *, tm, tn, tk):
    Mp, Kp = x.shape
    Sp = w.shape[0]
    grid = (Mp // tm, Sp // tn, Kp // tk)

    # Double-buffered x/w K-tiles + concat/out tiles + f32 accumulator.
    tile_bytes = 2 * 4 * (tm * tk + tn * tk + 2 * tm * tn) + 4 * tm * tn + (4 << 20)
    vmem_bytes = int(max(16 << 20, min(tile_bytes, 64 << 20)))

    return pl.pallas_call(
        _ktiled_kernel,
        out_shape=jax.ShapeDtypeStruct((Mp, Sp), x.dtype),
        grid_spec=pltpu.PrefetchScalarGridSpec(
            num_scalar_prefetch=0,
            grid=grid,
            in_specs=[
                pl.BlockSpec((tm, tk), lambda i, j, k: (i, k)),   # x K-tile
                pl.BlockSpec((tn, tk), lambda i, j, k: (j, k)),   # weight K-tile (S,K) layout
                pl.BlockSpec((tm, tn), lambda i, j, k: (i, j)),   # concat (constant over k)
            ],
            out_specs=pl.BlockSpec((tm, tn), lambda i, j, k: (i, j)),
            scratch_shapes=[pltpu.VMEM((tm, tn), jnp.float32)],
        ),
        compiler_params=pltpu.CompilerParams(
            dimension_semantics=("parallel", "parallel", "arbitrary"),
            vmem_limit_bytes=vmem_bytes,
        ),
    )(x, w, c)


# ---------------------------------------------------------------------------
# Public wrapper matching ConcatResnetTransform.forward
# ---------------------------------------------------------------------------
def concat_resnet_transform(concat_feature, origin_feature, weight,
                            *, tm=256, tn=512, tk=1024):
    """JAX wrapper matching ConcatResnetTransform.forward.

    concat_feature: (B, C, N, D, ...)  (any >=3-D shape; reshaped to (B, N, -1) as in PyTorch)
    origin_feature: (B, N, originDim)
    weight        : (sum(concatDim), originDim)   -- nn.Linear weight layout, used untransposed
    """
    shape = concat_feature.shape
    B, N = shape[0], shape[2]
    concat = concat_feature.reshape((B, N, -1))  # exact PyTorch raw reshape semantics
    S = concat.shape[-1]
    K = origin_feature.shape[-1]
    M = B * N

    x2d = origin_feature.reshape((M, K))
    c2d = concat.reshape((M, S))

    # Tile sizing: rows in multiples of 8 (sublane), output lanes in multiples of 128.
    tm_eff = _round_up(min(tm, _round_up(M, 8)), 8)
    Mp = _round_up(M, tm_eff)
    tn_eff = _round_up(min(tn, _round_up(S, 128)), 128)
    Sp = _round_up(S, tn_eff)

    # Decide whether K needs its own reduction grid axis.
    k128 = _round_up(K, 128)
    tile_k = k128 > tk
    if tile_k:
        tk_eff = _round_up(min(tk, k128), 128)
        Kp = _round_up(K, tk_eff)
    else:
        tk_eff = K
        Kp = K

    # Pure layout plumbing: zero-pad rows / lanes / K.  Padded rows & columns produce
    # ReLU(0 + 0) = 0 and are sliced away below; padded K contributes 0 to the matmul.
    if Mp != M:
        x2d = jnp.pad(x2d, ((0, Mp - M), (0, 0)))
        c2d = jnp.pad(c2d, ((0, Mp - M), (0, 0)))
    w = weight
    if Sp != S:
        c2d = jnp.pad(c2d, ((0, 0), (0, Sp - S)))
        w = jnp.pad(w, ((0, Sp - S), (0, 0)))
    if Kp != K:
        x2d = jnp.pad(x2d, ((0, 0), (0, Kp - K)))
        w = jnp.pad(w, ((0, 0), (0, Kp - K)))

    if tile_k:
        out2d = _concat_resnet_2d_ktiled(x2d, w, c2d, tm=tm_eff, tn=tn_eff, tk=tk_eff)
    else:
        out2d = _concat_resnet_2d_fullk(x2d, w, c2d, tm=tm_eff, tn=tn_eff)
    return out2d[:M, :S].reshape((B, N, S))


def _xavier_normal(key, out_dim, in_dim, gain):
    std = gain * jnp.sqrt(2.0 / (in_dim + out_dim))
    return std * jax.random.normal(key, (out_dim, in_dim), dtype=jnp.float32)


def _reference(concat_feature, origin_feature, weight):
    B, N = concat_feature.shape[0], concat_feature.shape[2]
    return jax.nn.relu(
        jnp.einsum("bnk,sk->bns", origin_feature, weight)
        + concat_feature.reshape((B, N, -1))
    )


if __name__ == "__main__":
    key = jax.random.PRNGKey(0)

    # --- Test 1: small shapes consistent with the module (single-pass path) --------
    #   concatDim = [8, 8]  -> sum = 16, originDim = 32
    #   concatFeature: (B=2, C=2, N=8, D=8) -> reshape -> (2, 8, 16)
    #   originFeature: (B=2, N=8, 32)
    concat_dim = [8, 8]
    origin_dim = 32
    B, C, N, D = 2, 2, 8, 8
    assert C * D == sum(concat_dim)

    k_w, k_c, k_o, key = jax.random.split(key, 4)
    weight = _xavier_normal(k_w, sum(concat_dim), origin_dim, gain=1.414)
    concat_feature = jax.random.normal(k_c, (B, C, N, D), dtype=jnp.float32)
    origin_feature = jax.random.normal(k_o, (B, N, origin_dim), dtype=jnp.float32)

    out = jax.block_until_ready(
        concat_resnet_transform(concat_feature, origin_feature, weight)
    )
    ref = _reference(concat_feature, origin_feature, weight)
    assert out.shape == (B, N, sum(concat_dim))
    assert jnp.allclose(out, ref, atol=1e-5, rtol=1e-5)

    # --- Test 2: larger originDim exercises the K-tiled accumulator path -----------
    origin_dim2 = 1536          # > tk threshold -> reduction grid axis
    B2, C2, N2, D2 = 2, 3, 16, 128   # sum(concatDim) = 384
    k_w, k_c, k_o, key = jax.random.split(key, 4)
    weight2 = _xavier_normal(k_w, C2 * D2, origin_dim2, gain=1.414)
    concat_feature2 = jax.random.normal(k_c, (B2, C2, N2, D2), dtype=jnp.float32)
    origin_feature2 = jax.random.normal(k_o, (B2, N2, origin_dim2), dtype=jnp.float32)

    out2 = jax.block_until_ready(
        concat_resnet_transform(concat_feature2, origin_feature2, weight2)
    )
    ref2 = _reference(concat_feature2, origin_feature2, weight2)
    assert out2.shape == (B2, N2, C2 * D2)
    assert jnp.allclose(out2, ref2, atol=1e-4, rtol=1e-4)

    print("KERNEL_OK")
</pallas_src>

<mosaic_0001>
module attributes {stable_mosaic.version = 11 : i64} {
  func.func @_fused_kernel(%arg0: i32, %arg1: i32, %arg2: memref<16x32xf32, #tpu.memory_space<vmem>>, %arg3: memref<128x32xf32, #tpu.memory_space<vmem>>, %arg4: memref<16x128xf32, #tpu.memory_space<vmem>>, %arg5: memref<16x128xf32, #tpu.memory_space<vmem>>) attributes {dimension_semantics = [#tpu.dimension_semantics<parallel>, #tpu.dimension_semantics<parallel>], iteration_bounds = array<i64: 1, 1>, scalar_prefetch = 0 : i64, scratch_operands = 0 : i64, tpu.core_type = #tpu.core_type<tc>, window_params = [{transform_indices = @transform_0, window_bounds = array<i64: 16, 32>}, {transform_indices = @transform_1, window_bounds = array<i64: 128, 32>}, {transform_indices = @transform_2, window_bounds = array<i64: 16, 128>}, {transform_indices = @transform_3, window_bounds = array<i64: 16, 128>}]} {
    %c0 = arith.constant 0 : index
    %c0_0 = arith.constant 0 : index
    %0 = vector.load %arg2[%c0, %c0_0] : memref<16x32xf32, #tpu.memory_space<vmem>>, vector<16x32xf32>
    %c0_1 = arith.constant 0 : index
    %c0_2 = arith.constant 0 : index
    %1 = vector.load %arg3[%c0_1, %c0_2] : memref<128x32xf32, #tpu.memory_space<vmem>>, vector<128x32xf32>
    %cst = arith.constant dense<0.000000e+00> : vector<16x128xf32>
    %2 = tpu.matmul %0, %1, %cst {dimension_numbers = #tpu.dot_dimension_numbers<[1], [1], [0], [0], [0, 0, 1, 0], [], []>} : vector<16x32xf32>, vector<128x32xf32>, vector<16x128xf32> -> vector<16x128xf32>
    %c0_3 = arith.constant 0 : index
    %c0_4 = arith.constant 0 : index
    %3 = vector.load %arg4[%c0_3, %c0_4] : memref<16x128xf32, #tpu.memory_space<vmem>>, vector<16x128xf32>
    %4 = arith.addf %2, %3 : vector<16x128xf32>
    %cst_5 = arith.constant 0.000000e+00 : f32
    %5 = vector.broadcast %cst_5 : f32 to vector<16x128xf32>
    %6 = arith.maximumf %4, %5 : vector<16x128xf32>
    %c0_6 = arith.constant 0 : index
    %c0_7 = arith.constant 0 : index
    %7 = vector.load %arg5[%c0_6, %c0_7] : memref<16x128xf32, #tpu.memory_space<vmem>>, vector<16x128xf32>
    tpu.vector_store %arg5[%c0_6, %c0_7], %6 {strides = array<i32>} : memref<16x128xf32, #tpu.memory_space<vmem>>, vector<16x128xf32>,
    return
  }
  func.func @transform_0(%arg0: i32, %arg1: i32) -> (i32, i32) {
    %c0_i32 = arith.constant 0 : i32
    %c0_i32_0 = arith.constant 0 : i32
    return %arg0, %c0_i32 : i32, i32
  }
  func.func @transform_1(%arg0: i32, %arg1: i32) -> (i32, i32) {
    %c0_i32 = arith.constant 0 : i32
    %c0_i32_0 = arith.constant 0 : i32
    return %arg1, %c0_i32 : i32, i32
  }
  func.func @transform_2(%arg0: i32, %arg1: i32) -> (i32, i32) {
    %c0_i32 = arith.constant 0 : i32
    return %arg0, %arg1 : i32, i32
  }
  func.func @transform_3(%arg0: i32, %arg1: i32) -> (i32, i32) {
    %c0_i32 = arith.constant 0 : i32
    return %arg0, %arg1 : i32, i32
  }
}

</mosaic_0001>

<bundles_post_ra>
// kernel: _concat_resnet_2d_fullk.1
= control target key start
LH: loop header
LB: loop body
LE: loop exit
PB: predicated region body
PF: predicated region fallthrough
CT: control target
= control target key end

     0   :  { %vm35_vm0 = vcmask 261120   ;;  %s466_s0 = inlined_call_operand.vmem [shape: f32[16,32], index: 0, kind: input, shape index: {}]   ;;  %s467_s1 = inlined_call_operand.vmem [shape: f32[128,32], index: 1, kind: input, shape index: {}]   ;;  %s468_s2 = inlined_call_operand.vmem [shape: f32[16,128], index: 2, kind: input, shape index: {}]   ;;  %s469_s3 = inlined_call_operand.hbm [shape: f32[16,128], index: 3, kind: output, shape index: {}]  }
   0x1   :  { %v17_v0 = vld [vmem:[%s467_s1] sm:$0xff]  ;;  %v18_v1 = vld [vmem:[%s467_s1 + $0x8] sm:$0xff]  ;;  %v19_v2 = vld [vmem:[%s467_s1 + $0x10] sm:$0xff] }
   0x2   :  { %v256_v3 = vpack.c.bf16 %v18_v1, %v17_v0  ;;  %vm365_vm1 = vmpackc.low %vm35_vm0, %vm35_vm0  ;;  %v20_v5 = vld [vmem:[%s467_s1 + $0x18] sm:$0xff]  ;;  %v15_v7 = vld [vmem:[%s466_s0] sm:$0xff] }
   0x3   :  { %v262_v6 = vpack.c.bf16 %v20_v5, %v19_v2  ;;  %v21_v8 = vld [vmem:[%s467_s1 + $0x20] sm:$0xff]  ;;  %v22_v9 = vld [vmem:[%s467_s1 + $0x28] sm:$0xff]  ;;  %253 = vmatprep.mubr.msk.f32.mxu0 %vm35_vm0, %v15_v7 }
   0x4   :  { %258 = vmatprep.subr.msk.bf16.mxu0 %vm365_vm1, %v256_v3 }
   0x5   :  { %261 = vmatpush3.bf16.xpose.msk.msra.mxu0 %vm365_vm1, %v256_v3 }
   0x6   :  { %264 = vmatprep.subr.msk.bf16.mxu0 %vm365_vm1, %v262_v6 }
   0x7   :  { %8 = vsyncpa [#allocation3], 0  ;;  %v268_v10 = vpack.c.bf16 %v22_v9, %v21_v8  ;;  %v23_v11 = vld [vmem:[%s467_s1 + $0x30] sm:$0xff]  ;;  %v24_v12 = vld [vmem:[%s467_s1 + $0x38] sm:$0xff]  ;;  %s331_s24 = smov [#allocation2]  }
   0x8   :  { %v274_v13 = vpack.c.bf16 %v24_v12, %v23_v11  ;;  %v25_v14 = vld [vmem:[%s467_s1 + $0x40] sm:$0xff]  ;;  %v26_v15 = vld [vmem:[%s467_s1 + $0x48] sm:$0xff]  ;;  %v27_v17 = vld [vmem:[%s467_s1 + $0x50] sm:$0xff]  ;;  %s174_s25 = sshll.u32 %s331_s24, 4  ;;  %s175_s25 = int_to_ptr.vmem [resolvable:$true] %s174_s25 }
   0x9   :  { %v280_v16 = vpack.c.bf16 %v26_v15, %v25_v14  ;;  %v28_v18 = vld [vmem:[%s467_s1 + $0x58] sm:$0xff]  ;;  %v29_v20 = vld [vmem:[%s467_s1 + $0x60] sm:$0xff]  ;;  %v30_v21 = vld [vmem:[%s467_s1 + $0x68] sm:$0xff]  ;;  %p312_p1 = scmp.lt.s32.totalorder %s175_s25, %s175_s25 }
   0xa   :  { %v286_v19 = vpack.c.bf16 %v28_v18, %v27_v17  ;;  %v292_v22 = vpack.c.bf16 %v30_v21, %v29_v20  ;;  %v31_v23 = vld [vmem:[%s467_s1 + $0x70] sm:$0xff]  ;;  %v32_v24 = vld [vmem:[%s467_s1 + $0x78] sm:$0xff]  ;;  %v16_v26 = vld [vmem:[%s466_s0 + $0x8] sm:$0xff]  ;;  %s307_s0 = scalar_lea.vmem %s175_s25, 256 }
   0xb   :  { %v298_v25 = vpack.c.bf16 %v32_v24, %v31_v23  ;;  %v34_v27 = vld [vmem:[%s468_s2 + $0x8] sm:$0xff]  ;;  %v33_v28 = vld [vmem:[%s468_s2] sm:$0xff]  ;;  %p308_p0 = scmp.ne.s32.totalorder %s175_s25, %s307_s0  ;;  %p313_p2 = scmp.lt.s32.totalorder %s307_s0, %s307_s0 }
   0xd   :  { %267 = vmatpush3.bf16.xpose.msk.msra.mxu0 %vm365_vm1, %v262_v6  ;;  %p314_p3 = por %p313_p2, %p312_p1 }
   0xe   :  { %270 = vmatprep.subr.msk.bf16.mxu0 %vm365_vm1, %v268_v10 }
   0xf   :  { %p315_p4 = pnand %p314_p3, %p308_p0 }
  0x15   :  { %273 = vmatpush3.bf16.xpose.msk.msra.mxu0 %vm365_vm1, %v268_v10 }
  0x16   :  { %276 = vmatprep.subr.msk.bf16.mxu0 %vm365_vm1, %v274_v13 }
  0x1d   :  { %279 = vmatpush3.bf16.xpose.msk.msra.mxu0 %vm365_vm1, %v274_v13 }
  0x1e   :  { %282 = vmatprep.subr.msk.bf16.mxu0 %vm365_vm1, %v280_v16 }
  0x25   :  { %285 = vmatpush3.bf16.xpose.msk.msra.mxu0 %vm365_vm1, %v280_v16 }
  0x26   :  { %288 = vmatprep.subr.msk.bf16.mxu0 %vm365_vm1, %v286_v19 }
  0x2d   :  { %291 = vmatpush3.bf16.xpose.msk.msra.mxu0 %vm365_vm1, %v286_v19 }
  0x2e   :  { %294 = vmatprep.subr.msk.bf16.mxu0 %vm365_vm1, %v292_v22 }
  0x35   :  { %297 = vmatpush3.bf16.xpose.msk.msra.mxu0 %vm365_vm1, %v292_v22 }
  0x36   :  { %300 = vmatprep.subr.msk.bf16.mxu0 %vm365_vm1, %v298_v25 }
  0x3d   :  { %303 = vmatpush3.bf16.xpose.msk.msra.mxu0 %vm365_vm1, %v298_v25 }
  0x44   :  { %254 = vmatmul.mubr.msk.f32.vlgmr.msra.gmra.mrb[0].mxu0 %vm35_vm0, %v16_v26 }
 0x117   :  { %v255_v29 = vpop.f32.mrb[0].mxu0 }
 0x118   :  { %v162_v30 = vadd.f32 %v255_v29, %v34_v27  ;;  %v156_v31 = vpop.f32.mrb[1].mxu0 }
 0x119   :  { %v157_v32 = vadd.f32 %v156_v31, %v33_v28 }
 0x11a   :  { %v166_v33 = vmax.f32 %v162_v30, 0.0 }
 0x11b   :  { %v165_v34 = vmax.f32 %v157_v32, 0.0 }
 0x11c   :  { %168 = vst [vmem:[#allocation2 + $0x8] sm:$0xff] %v166_v33 }
 0x11d   :  { %167 = vst [vmem:[#allocation2] sm:$0xff] %v165_v34 }
 0x11e   :  { %318 = shalt.err (!%p315_p4)
}
 0x11f   :  { %s319_s27 = scalar_lea.hbm %s469_s3, 256 }
 0x120   :  { %p320_p5 = scmp.ne.s32.totalorder %s469_s3, %s319_s27  ;;  %p323_p6 = scmp.lt.u32.totalorder %s319_s27, %s469_s3 }
 0x122   :  { %p325_p7 = pnand %p323_p6, %p320_p5 }
 0x124   :  { %328 = shalt.err (!%p325_p7)
}
 0x125   :  { %s332_s5 = smov 128   ;;  %s333_s6 = smov 8  }
 0x126   :  { %180 = dma.vmem_to_hbm [thread:$0]  %s175_s25, 256, %s469_s3, [#allocation3], %s332_s5, %s332_s5, %s333_s6  }
 0x127   :  { %329 = dma.done.wait [#allocation3], 256  }
 0x128   :  { %330 = vsyncadd [#allocation3], 4294967040 }
 0x129   :  { %184 = vsyncpa [#allocation3], 1 }

</bundles_post_ra>
